<compile_context>
chip_gen: v6e
topology: v6e:2x2x1
jax: 0.10.0
libtpu: 0.0.40
codegen_flags: <defaults>
</compile_context>

<pallas_src>
import functools

import jax
import jax.numpy as jnp
import numpy as np
from jax.experimental import pallas as pl
from jax.experimental.pallas import tpu as pltpu

K1_PAD = 128   # conv-output features (27) padded to a full lane tile for the fc matmul
OUT_PAD = 8    # fc outputs (5) padded to 8 lanes for the HBM write (16x less than 128)


def _round_up(a, b):
    return (a + b - 1) // b * b


def network_kernel(x_ref, w1_ref, w2_ref, b_ref, out_ref):
    # x_ref:   (tile_n, CHW)      flattened input rows (torch (c,h,w) order)
    # w1_ref:  (CHW, K1_PAD)      conv folded into a dense matmul weight (zero padded)
    # w2_ref:  (K1_PAD, OUT_PAD)  fc weight (zero padded)
    # b_ref:   (1, OUT_PAD)       fc bias (zero padded)
    # out_ref: (tile_n, OUT_PAD)
    y = jnp.dot(x_ref[...], w1_ref[...], preferred_element_type=jnp.float32)
    y = jnp.maximum(y, 0.0)                          # relu(conv1(x)), flattened features
    z = jnp.dot(y, w2_ref[...], preferred_element_type=jnp.float32)
    out_ref[...] = jnp.maximum(z + b_ref[...], 0.0)  # relu(fc1(.))


def prepare_weights(conv_w, fc_w, fc_b, in_hw=(4, 4)):
    """One-time weight glue (im2col folded into W1, zero padding), off the hot path."""
    conv_w = np.asarray(conv_w, np.float32)
    fc_w = np.asarray(fc_w, np.float32)
    fc_b = np.asarray(fc_b, np.float32)
    CO, C, KH, KW = conv_w.shape
    OUT, IN = fc_w.shape
    H, W = in_hw
    OH, OW = H - KH + 1, W - KW + 1
    assert IN == CO * OH * OW, (IN, CO, OH, OW)
    assert OUT <= OUT_PAD and IN <= K1_PAD

    # W1[(ci,h,w), (co,oh,ow)] = conv_w[co, ci, kh, kw] for h=oh+kh, w=ow+kw; 0 elsewhere.
    # Row order matches torch x.reshape(N, C*H*W); column order matches torch
    # .view(N, -1) of the (N, CO, OH, OW) conv output.
    w1 = np.zeros((C * H * W, K1_PAD), np.float32)
    for co in range(CO):
        for oh in range(OH):
            for ow in range(OW):
                col = co * OH * OW + oh * OW + ow
                for ci in range(C):
                    for kh in range(KH):
                        for kw in range(KW):
                            row = ci * H * W + (oh + kh) * W + (ow + kw)
                            w1[row, col] = conv_w[co, ci, kh, kw]

    w2 = np.zeros((K1_PAD, OUT_PAD), np.float32)
    w2[:IN, :OUT] = fc_w.T
    b = np.zeros((1, OUT_PAD), np.float32)
    b[0, :OUT] = fc_b
    return jnp.asarray(w1), jnp.asarray(w2), jnp.asarray(b)


def network_forward(x, w1, w2, b, *, n_out=5, max_tile_n=2048, min_rows_for_pallas=0):
    """x: (N, C, H, W) float32 in torch NCHW layout. Returns (N, n_out) float32."""
    N, C, H, W = x.shape
    CHW = C * H * W
    assert w1.shape == (CHW, K1_PAD) and w2.shape == (K1_PAD, OUT_PAD)
    x_flat = x.reshape(N, CHW)                 # torch .view flatten order (c, h, w)

    if N < min_rows_for_pallas:
        # Small-batch escape hatch: at tiny N the pallas_call launch dominates.
        y = jnp.maximum(x_flat @ w1, 0.0)
        return jnp.maximum(y @ w2 + b, 0.0)[:, :n_out]

    # Batch tiling: zero-pad rows to a multiple of the tile (padded rows sliced off).
    tile_n = min(max_tile_n, _round_up(N, 8))
    n_pad = _round_up(N, tile_n)
    if n_pad != N:
        x_flat = jnp.pad(x_flat, ((0, n_pad - N), (0, 0)))

    out = pl.pallas_call(
        network_kernel,
        out_shape=jax.ShapeDtypeStruct((n_pad, OUT_PAD), jnp.float32),
        grid=(n_pad // tile_n,),
        in_specs=[
            pl.BlockSpec((tile_n, CHW), lambda i: (i, 0)),        # batch-tiled input rows
            pl.BlockSpec((CHW, K1_PAD), lambda i: (0, 0)),        # grid-invariant weights
            pl.BlockSpec((K1_PAD, OUT_PAD), lambda i: (0, 0)),
            pl.BlockSpec((1, OUT_PAD), lambda i: (0, 0)),
        ],
        out_specs=pl.BlockSpec((tile_n, OUT_PAD), lambda i: (i, 0)),
        compiler_params=pltpu.CompilerParams(
            dimension_semantics=("parallel",)),
    )(x_flat, w1, w2, b)

    return out[:N, :n_out]


def reference_forward(x, conv_w, fc_w, fc_b):
    """Pure-JAX reference matching the PyTorch semantics (NCHW / OIHW)."""
    y = jax.lax.conv_general_dilated(
        x, conv_w, window_strides=(1, 1), padding="VALID",
        dimension_numbers=("NCHW", "OIHW", "NCHW"))
    y = jnp.maximum(y, 0.0)
    y = y.reshape(y.shape[0], -1)                   # torch .view(N, -1): (c, h, w) order
    return jnp.maximum(y @ fc_w.T + fc_b, 0.0)


if __name__ == "__main__":
    # Deterministic parameters, exactly as set in the PyTorch __init__.
    conv_w = jnp.array(
        [[[[1.0, 1.0], [2.0, 2.0]], [[1.0, 2.0], [1.0, 2.0]]],
         [[[2.0, 2.0], [1.0, 1.0]], [[2.0, 1.0], [2.0, 1.0]]],
         [[[0.0, 5.0], [0.0, 3.0]], [[2.0, 0.0], [0.0, 10.0]]]],
        dtype=jnp.float32)                                          # (3, 2, 2, 2)
    fc_w = jnp.stack([jnp.full((27,), v, dtype=jnp.float32)
                      for v in (2.5, -1.2, 0.5, 3.5, 5.2)])         # (5, 27)
    fc_b = jnp.array([3.0, 4.0, 5.0, 6.0, 7.0], dtype=jnp.float32)  # (5,)
    n_out = int(fc_w.shape[0])

    # One-time weight glue (im2col fold + padding), outside the hot path.
    w1, w2, b = prepare_weights(conv_w, fc_w, fc_b, in_hw=(4, 4))

    # Small deterministic input: fc1 in-features 3*3*3 imply x of shape (N, 2, 4, 4).
    x = jax.random.normal(jax.random.PRNGKey(0), (2, 2, 4, 4), dtype=jnp.float32)
    fwd = jax.jit(functools.partial(network_forward, n_out=n_out))
    out = jax.block_until_ready(fwd(x, w1, w2, b))
    ref = reference_forward(x, conv_w, fc_w, fc_b)
    assert out.shape == (2, n_out)
    assert jnp.allclose(out, ref, atol=1e-4, rtol=1e-4), (out, ref)

    # Multi-tile check: batch padding + several grid steps (sharded across cores).
    x_big = jax.random.normal(jax.random.PRNGKey(1), (600, 2, 4, 4), dtype=jnp.float32)
    fwd_big = jax.jit(functools.partial(network_forward, n_out=n_out, max_tile_n=256))
    out_big = jax.block_until_ready(fwd_big(x_big, w1, w2, b))
    ref_big = reference_forward(x_big, conv_w, fc_w, fc_b)
    assert out_big.shape == (600, n_out)
    assert jnp.allclose(out_big, ref_big, atol=1e-2, rtol=5e-4)

    print("KERNEL_OK")
</pallas_src>

<mosaic_0001>
module attributes {stable_mosaic.version = 11 : i64} {
  func.func @network_kernel(%arg0: i32, %arg1: memref<8x32xf32, #tpu.memory_space<vmem>>, %arg2: memref<32x128xf32, #tpu.memory_space<vmem>>, %arg3: memref<128x8xf32, #tpu.memory_space<vmem>>, %arg4: memref<1x8xf32, #tpu.memory_space<vmem>>, %arg5: memref<8x8xf32, #tpu.memory_space<vmem>>) attributes {dimension_semantics = [#tpu.dimension_semantics<parallel>], iteration_bounds = array<i64: 1>, scalar_prefetch = 0 : i64, scratch_operands = 0 : i64, tpu.core_type = #tpu.core_type<tc>, window_params = [{transform_indices = @transform_0, window_bounds = array<i64: 8, 32>}, {pipeline_mode = #tpu.pipeline_mode<synchronous>, transform_indices = @transform_1, window_bounds = array<i64: 32, 128>}, {pipeline_mode = #tpu.pipeline_mode<synchronous>, transform_indices = @transform_2, window_bounds = array<i64: 128, 8>}, {pipeline_mode = #tpu.pipeline_mode<synchronous>, transform_indices = @transform_3, window_bounds = array<i64: 1, 8>}, {transform_indices = @transform_4, window_bounds = array<i64: 8, 8>}]} {
    %c0 = arith.constant 0 : index
    %c0_0 = arith.constant 0 : index
    %0 = vector.load %arg1[%c0, %c0_0] : memref<8x32xf32, #tpu.memory_space<vmem>>, vector<8x32xf32>
    %c0_1 = arith.constant 0 : index
    %c0_2 = arith.constant 0 : index
    %1 = vector.load %arg2[%c0_1, %c0_2] : memref<32x128xf32, #tpu.memory_space<vmem>>, vector<32x128xf32>
    %cst = arith.constant dense<0.000000e+00> : vector<8x128xf32>
    %2 = tpu.matmul %0, %1, %cst {dimension_numbers = #tpu.dot_dimension_numbers<[1], [0], [0], [1], [0, 0, 1, 1], [], []>} : vector<8x32xf32>, vector<32x128xf32>, vector<8x128xf32> -> vector<8x128xf32>
    %cst_3 = arith.constant 0.000000e+00 : f32
    %3 = vector.broadcast %cst_3 : f32 to vector<8x128xf32>
    %4 = arith.maximumf %2, %3 : vector<8x128xf32>
    %c0_4 = arith.constant 0 : index
    %c0_5 = arith.constant 0 : index
    %5 = vector.load %arg3[%c0_4, %c0_5] : memref<128x8xf32, #tpu.memory_space<vmem>>, vector<128x8xf32>
    %cst_6 = arith.constant dense<0.000000e+00> : vector<8x8xf32>
    %6 = tpu.matmul %4, %5, %cst_6 {dimension_numbers = #tpu.dot_dimension_numbers<[1], [0], [0], [1], [0, 0, 1, 1], [], []>} : vector<8x128xf32>, vector<128x8xf32>, vector<8x8xf32> -> vector<8x8xf32>
    %c0_7 = arith.constant 0 : index
    %c0_8 = arith.constant 0 : index
    %7 = vector.load %arg4[%c0_7, %c0_8] : memref<1x8xf32, #tpu.memory_space<vmem>>, vector<1x8xf32>
    %8 = vector.broadcast %7 : vector<1x8xf32> to vector<8x8xf32>
    %9 = arith.addf %6, %8 : vector<8x8xf32>
    %cst_9 = arith.constant 0.000000e+00 : f32
    %10 = vector.broadcast %cst_9 : f32 to vector<8x8xf32>
    %11 = arith.maximumf %9, %10 : vector<8x8xf32>
    %c0_10 = arith.constant 0 : index
    %c0_11 = arith.constant 0 : index
    %12 = vector.load %arg5[%c0_10, %c0_11] : memref<8x8xf32, #tpu.memory_space<vmem>>, vector<8x8xf32>
    tpu.vector_store %arg5[%c0_10, %c0_11], %11 {strides = array<i32>} : memref<8x8xf32, #tpu.memory_space<vmem>>, vector<8x8xf32>,
    return
  }
  func.func @transform_0(%arg0: i32) -> (i32, i32) {
    %c0_i32 = arith.constant 0 : i32
    %c0_i32_0 = arith.constant 0 : i32
    return %arg0, %c0_i32 : i32, i32
  }
  func.func @transform_1(%arg0: i32) -> (i32, i32) {
    %c0_i32 = arith.constant 0 : i32
    %c0_i32_0 = arith.constant 0 : i32
    %c0_i32_1 = arith.constant 0 : i32
    return %c0_i32, %c0_i32_0 : i32, i32
  }
  func.func @transform_2(%arg0: i32) -> (i32, i32) {
    %c0_i32 = arith.constant 0 : i32
    %c0_i32_0 = arith.constant 0 : i32
    %c0_i32_1 = arith.constant 0 : i32
    return %c0_i32, %c0_i32_0 : i32, i32
  }
  func.func @transform_3(%arg0: i32) -> (i32, i32) {
    %c0_i32 = arith.constant 0 : i32
    %c0_i32_0 = arith.constant 0 : i32
    %c0_i32_1 = arith.constant 0 : i32
    return %c0_i32, %c0_i32_0 : i32, i32
  }
  func.func @transform_4(%arg0: i32) -> (i32, i32) {
    %c0_i32 = arith.constant 0 : i32
    %c0_i32_0 = arith.constant 0 : i32
    return %arg0, %c0_i32 : i32, i32
  }
}

</mosaic_0001>

<bundles_post_ra>
// kernel: network_forward.1
= control target key start
LH: loop header
LB: loop body
LE: loop exit
PB: predicated region body
PF: predicated region fallthrough
CT: control target
= control target key end

     0   :  { %v269_v0 = vmov 0.0   ;;  %vm270_vm0 = vmmov 0   ;;  %vm22_vm1 = vcmask 261120   ;;  %vm191_vm2 = vcmask 64512   ;;  %s389_s1 = inlined_call_operand.vmem [shape: f32[32,128], index: 1, kind: input, shape index: {}]   ;;  %s390_s2 = inlined_call_operand.vmem [shape: f32[128,8], index: 2, kind: input, shape index: {}]   ;;  %s391_s0 = inlined_call_operand.vmem [shape: f32[8,32], index: 0, kind: input, shape index: {}]   ;;  %s392_s3 = inlined_call_operand.vmem [shape: f32[1,8], index: 3, kind: input, shape index: {}]   ;;  %s393_s4 = inlined_call_operand.vmem [shape: f32[8,8], index: 4, kind: output, shape index: {}]  }
   0x1   :  { %221 = vmatprep.subr.mxu0 %v269_v0  ;;  %v21_v1 = vld [vmem:[%s389_s1 + $0x18] sm:$0xff]  ;;  %v20_v2 = vld [vmem:[%s389_s1 + $0x10] sm:$0xff]  ;;  %229 = vmatprep.mubr.msk.f32.mxu0 %vm270_vm0, %v269_v0  ;;  %v19_v4 = vld [vmem:[%s389_s1 + $0x8] sm:$0xff] }
   0x2   :  { %222 = vmatpush3.msra.mxu0 %v21_v1  ;;  %232 = vmatprep.subr.mxu1 %v269_v0  ;;  %v112_v3 = vld [vmem:[%s390_s2 + $0x78] sm:$0xff]  ;;  %v111_v5 = vld [vmem:[%s390_s2 + $0x70] sm:$0xff]  ;;  %v110_v6 = vld [vmem:[%s390_s2 + $0x68] sm:$0xff] }
   0x3   :  { %223 = vmatprep.subr.mxu0 %v269_v0  ;;  %233 = vmatpush3.msra.mxu1 %v112_v3  ;;  %v18_v7 = vld [vmem:[%s389_s1] sm:$0xff]  ;;  %v108_v10 = vld [vmem:[%s390_s2 + $0x58] sm:$0xff]  ;;  %v107_v11 = vld [vmem:[%s390_s2 + $0x50] sm:$0xff] }
   0x4   :  { %224 = vmatpush3.msra.mxu0 %v20_v2  ;;  %234 = vmatprep.subr.mxu1 %v269_v0  ;;  %v17_v8 = vld [vmem:[%s391_s0] sm:$0xff]  ;;  %v106_v12 = vld [vmem:[%s390_s2 + $0x48] sm:$0xff]  ;;  %v104_v14 = vld [vmem:[%s390_s2 + $0x38] sm:$0xff] }
   0x5   :  { %225 = vmatprep.subr.mxu0 %v269_v0  ;;  %235 = vmatpush3.msra.mxu1 %v111_v5  ;;  %v109_v9 = vld [vmem:[%s390_s2 + $0x60] sm:$0xff]  ;;  %v103_v15 = vld [vmem:[%s390_s2 + $0x30] sm:$0xff]  ;;  %v102_v16 = vld [vmem:[%s390_s2 + $0x28] sm:$0xff] }
   0x6   :  { %226 = vmatpush3.msra.mxu0 %v19_v4  ;;  %236 = vmatprep.subr.mxu1 %v269_v0  ;;  %v105_v13 = vld [vmem:[%s390_s2 + $0x40] sm:$0xff]  ;;  %v100_v18 = vld [vmem:[%s390_s2 + $0x18] sm:$0xff]  ;;  %v99_v19 = vld [vmem:[%s390_s2 + $0x10] sm:$0xff] }
   0x7   :  { %227 = vmatprep.subr.mxu0 %v269_v0  ;;  %237 = vmatpush3.msra.mxu1 %v110_v6  ;;  %v101_v17 = vld [vmem:[%s390_s2 + $0x20] sm:$0xff]  ;;  %v98_v20 = vld [vmem:[%s390_s2 + $0x8] sm:$0xff] }
   0x8   :  { %228 = vmatpush3.msra.mxu0 %v18_v7  ;;  %238 = vmatprep.subr.mxu1 %v269_v0  ;;  %v97_v21 = vld [vmem:[%s390_s2] sm:$0xff] }
   0x9   :  { %230 = vmatmul.mubr.msk.f32.vlgmr.msra.gmra.mxu0 %vm22_vm1, %v17_v8  ;;  %239 = vmatpush3.msra.mxu1 %v109_v9  ;;  %v198_v25 = vld [vmem:[%s392_s3] ss:$0 sm:$0xff] }
   0xa   :  { %240 = vmatprep.subr.mxu1 %v269_v0  ;;  %264 = vmatprep.mubr.msk.f32.mxu1 %vm270_vm0, %v269_v0 }
   0xb   :  { %241 = vmatpush3.msra.mxu1 %v108_v10 }
   0xc   :  { %242 = vmatprep.subr.mxu1 %v269_v0 }
   0xd   :  { %243 = vmatpush3.msra.mxu1 %v107_v11 }
   0xe   :  { %244 = vmatprep.subr.mxu1 %v269_v0 }
   0xf   :  { %245 = vmatpush3.msra.mxu1 %v106_v12 }
  0x10   :  { %246 = vmatprep.subr.mxu1 %v269_v0 }
  0x11   :  { %247 = vmatpush3.msra.mxu1 %v105_v13 }
  0x12   :  { %248 = vmatprep.subr.mxu1 %v269_v0 }
  0x13   :  { %249 = vmatpush3.msra.mxu1 %v104_v14 }
  0x14   :  { %250 = vmatprep.subr.mxu1 %v269_v0 }
  0x15   :  { %251 = vmatpush3.msra.mxu1 %v103_v15 }
  0x16   :  { %252 = vmatprep.subr.mxu1 %v269_v0 }
  0x17   :  { %253 = vmatpush3.msra.mxu1 %v102_v16 }
  0x18   :  { %254 = vmatprep.subr.mxu1 %v269_v0 }
  0x19   :  { %255 = vmatpush3.msra.mxu1 %v101_v17 }
  0x1a   :  { %256 = vmatprep.subr.mxu1 %v269_v0 }
  0x1b   :  { %257 = vmatpush3.msra.mxu1 %v100_v18 }
  0x1c   :  { %258 = vmatprep.subr.mxu1 %v269_v0 }
  0x1d   :  { %259 = vmatpush3.msra.mxu1 %v99_v19 }
  0x1e   :  { %260 = vmatprep.subr.mxu1 %v269_v0 }
  0x1f   :  { %261 = vmatpush3.msra.mxu1 %v98_v20 }
  0x20   :  { %262 = vmatprep.subr.mxu1 %v269_v0 }
  0x21   :  { %263 = vmatpush3.msra.mxu1 %v97_v21 }
  0xc9   :  { %v92_v22 = vpop.f32.mrf.mxu0 }
  0xca   :  { %v96_v23 = vmax.f32 %v92_v22, 0.0 }
  0xcb   :  { %v231_v24 = vpop.f32.mrf.mxu0 }
  0xcc   :  { %265 = vmatmul.mubr.f32.vlgmr.msra.gmra.mxu1 %v96_v23 }
 0x18c   :  { %v186_v26 = vpop.f32.mrf.mxu1 }
 0x18d   :  { %v187_v27 = vadd.f32 %v198_v25, %v186_v26 }
 0x18e   :  { %v266_v28 = vpop.f32.mrf.mxu1 }
 0x18f   :  { %v190_v29 = vmax.f32 %v187_v27, 0.0 }
 0x191   :  { %192 = vst.msk [vmem:[%s393_s4] sm:$0xff] %vm191_vm2, %v190_v29 }

</bundles_post_ra>
